<compile_context>
chip_gen: v7x
topology: tpu7x:2x2x1
jax: 0.10.0
libtpu: 0.0.40
codegen_flags: <defaults>
</compile_context>

<pallas_src>
import jax
import jax.numpy as jnp
from jax.experimental import pallas as pl
from jax.experimental.pallas import tpu as pltpu


def _bmm_fused_kernel(x_ref, w_ref, o_ref):
    # x_ref: (S, H)       activations for the current batch row
    # w_ref: (H, E*H)     all expert weights for this batch row, concatenated along N
    # o_ref: (S, E*H)     fused output slab (o[:, e*H:(e+1)*H] == x @ W_e)
    o_ref[...] = jnp.dot(
        x_ref[...],
        w_ref[...],
        preferred_element_type=jnp.float32,
        precision=jax.lax.Precision.HIGHEST,
    ).astype(o_ref.dtype)


def bmm_model_forward(x, weights):
    """x: (B, S, H); weights: (B, E, H, H) -> (B, E*S, H) (cat of per-expert BMMs)."""
    B, S, H = x.shape
    E = weights.shape[1]
    assert weights.shape == (B, E, H, H)

    # Rearrange weights once, outside the kernel: (B, E, H, H) -> (B, H, E*H)
    # so w_cat[b, i, e*H + j] == weights[b, e, i, j].
    w_cat = jnp.transpose(weights, (0, 2, 1, 3)).reshape(B, H, E * H)

    out_slab = pl.pallas_call(
        _bmm_fused_kernel,
        out_shape=jax.ShapeDtypeStruct((B, S, E * H), x.dtype),
        grid=(B,),
        in_specs=[
            # x: one batch row, full (S, H); batch dim squeezed out of the kernel ref.
            pl.BlockSpec((pl.Squeezed(), S, H), lambda b: (b, 0, 0)),
            # weights: full (H, E*H) fused block for this batch row.
            pl.BlockSpec((pl.Squeezed(), H, E * H), lambda b: (b, 0, 0)),
        ],
        # One dense (S, E*H) output slab per batch row (single, wide store region).
        out_specs=pl.BlockSpec((pl.Squeezed(), S, E * H), lambda b: (b, 0, 0)),
        compiler_params=pltpu.CompilerParams(
            dimension_semantics=("parallel",),
        ),
    )(x, w_cat)

    # Layout plumbing in the wrapper (cheap XLA reshape/transpose, not kernel work):
    # (B, S, E*H) -> (B, S, E, H) -> (B, E, S, H) -> (B, E*S, H)
    return jnp.transpose(out_slab.reshape(B, S, E, H), (0, 2, 1, 3)).reshape(B, E * S, H)


def bmm_model_reference(x, weights):
    # Pure-JAX f32 reference of the PyTorch forward (cat along dim=1 of per-expert BMMs).
    B, S, H = x.shape
    E = weights.shape[1]
    out = jnp.einsum(
        "bsh,behk->besk", x, weights, precision=jax.lax.Precision.HIGHEST
    )  # (B, E, S, H)
    return out.reshape(B, E * S, H)


if __name__ == "__main__":
    # Small, deterministic shapes consistent with the module.
    batch_size = 2
    seq = 8
    hidden_dim = 32
    num_experts = 3

    key = jax.random.PRNGKey(0)
    kx, kw = jax.random.split(key)

    x = jax.random.normal(kx, (batch_size, seq, hidden_dim), dtype=jnp.float32)
    # Deterministic "randn"-style expert weights, stacked batch-major: (B, E, H, H).
    weights = jax.random.normal(
        kw, (batch_size, num_experts, hidden_dim, hidden_dim), dtype=jnp.float32
    )

    out = bmm_model_forward(x, weights)
    out = jax.block_until_ready(out)

    ref = bmm_model_reference(x, weights)
    assert out.shape == (batch_size, num_experts * seq, hidden_dim)
    # f32 operands + f32 accumulation on both sides -> tight tolerance.
    assert jnp.allclose(out, ref, atol=1e-4, rtol=1e-5), float(jnp.max(jnp.abs(out - ref)))

    print("KERNEL_OK")
</pallas_src>

<mosaic_0001>
module attributes {stable_mosaic.version = 11 : i64} {
  func.func @_bmm_fused_kernel(%arg0: i32, %arg1: memref<1x8x32xf32, #tpu.memory_space<vmem>>, %arg2: memref<1x32x96xf32, #tpu.memory_space<vmem>>, %arg3: memref<1x8x96xf32, #tpu.memory_space<vmem>>) attributes {dimension_semantics = [#tpu.dimension_semantics<parallel>], iteration_bounds = array<i64: 2>, scalar_prefetch = 0 : i64, scratch_operands = 0 : i64, tpu.core_type = #tpu.core_type<tc>, window_params = [{transform_indices = @transform_0, window_bounds = array<i64: 1, 8, 32>}, {transform_indices = @transform_1, window_bounds = array<i64: 1, 32, 96>}, {transform_indices = @transform_2, window_bounds = array<i64: 1, 8, 96>}]} {
    %c0 = arith.constant 0 : index
    %c0_0 = arith.constant 0 : index
    %c0_1 = arith.constant 0 : index
    %0 = vector.load %arg1[%c0, %c0_0, %c0_1] : memref<1x8x32xf32, #tpu.memory_space<vmem>>, vector<1x8x32xf32>
    %1 = vector.shape_cast %0 : vector<1x8x32xf32> to vector<8x32xf32>
    %c0_2 = arith.constant 0 : index
    %c0_3 = arith.constant 0 : index
    %c0_4 = arith.constant 0 : index
    %2 = vector.load %arg2[%c0_2, %c0_3, %c0_4] : memref<1x32x96xf32, #tpu.memory_space<vmem>>, vector<1x32x96xf32>
    %3 = vector.shape_cast %2 : vector<1x32x96xf32> to vector<32x96xf32>
    %cst = arith.constant dense<0.000000e+00> : vector<8x96xf32>
    %4 = tpu.matmul %1, %3, %cst {dimension_numbers = #tpu.dot_dimension_numbers<[1], [0], [0], [1], [0, 0, 1, 1], [], []>, precision = #tpu.contract_precision<fp32>} : vector<8x32xf32>, vector<32x96xf32>, vector<8x96xf32> -> vector<8x96xf32>
    %c0_5 = arith.constant 0 : index
    %c0_6 = arith.constant 0 : index
    %c0_7 = arith.constant 0 : index
    %5 = vector.load %arg3[%c0_5, %c0_6, %c0_7] : memref<1x8x96xf32, #tpu.memory_space<vmem>>, vector<1x8x96xf32>
    %6 = vector.shape_cast %5 : vector<1x8x96xf32> to vector<8x96xf32>
    %7 = vector.shape_cast %4 : vector<8x96xf32> to vector<1x8x96xf32>
    tpu.vector_store %arg3[%c0_5, %c0_6, %c0_7], %7 {strides = array<i32>} : memref<1x8x96xf32, #tpu.memory_space<vmem>>, vector<1x8x96xf32>,
    return
  }
  func.func @transform_0(%arg0: i32) -> (i32, i32, i32) {
    %c0_i32 = arith.constant 0 : i32
    %c0_i32_0 = arith.constant 0 : i32
    %c0_i32_1 = arith.constant 0 : i32
    return %arg0, %c0_i32, %c0_i32_0 : i32, i32, i32
  }
  func.func @transform_1(%arg0: i32) -> (i32, i32, i32) {
    %c0_i32 = arith.constant 0 : i32
    %c0_i32_0 = arith.constant 0 : i32
    %c0_i32_1 = arith.constant 0 : i32
    return %arg0, %c0_i32, %c0_i32_0 : i32, i32, i32
  }
  func.func @transform_2(%arg0: i32) -> (i32, i32, i32) {
    %c0_i32 = arith.constant 0 : i32
    %c0_i32_0 = arith.constant 0 : i32
    %c0_i32_1 = arith.constant 0 : i32
    return %arg0, %c0_i32, %c0_i32_0 : i32, i32, i32
  }
}

</mosaic_0001>

<bundles_post_ra>
// kernel: tpu_custom_call.1
= control target key start
LH: loop header
LB: loop body
LE: loop exit
PB: predicated region body
PF: predicated region fallthrough
CT: control target
= control target key end

     0   :  { %7 = vsyncpa [#allocation3], 0  ;;  %s1411_s0 = inlined_call_operand.hbm [shape: f32[2,8,32], index: 0, kind: input, shape index: {}]   ;;  %s1412_s1 = inlined_call_operand.hbm [shape: f32[2,32,96], index: 1, kind: input, shape index: {}]   ;;  %s1413_s2 = inlined_call_operand.hbm [shape: f32[2,8,96], index: 2, kind: output, shape index: {}]  }
   0x1   :  { %9 = vsyncpa [#allocation3 + $0x1], 0 }
   0x2   :  { %10 = vsyncpa [#allocation6], 0 }
   0x3   :  { %12 = vsyncpa [#allocation6 + $0x1], 0 }
   0x4   :  { %13 = vsyncpa [#allocation4], 0 }
   0x5   :  { %15 = vsyncpa [#allocation4 + $0x1], 0  ;;  %s1171_s9 = smov 0   ;;  %s1173_s10 = smov 0  }
   0x6   :  { %s1175_s11 = smov 0   ;;  %s1177_s12 = smov 0  }
   0x7 LB: > { %s1192_s13 = sadd.s32 4294967295, %s1146_s12   ;;  %s802_s14 = sadd.s32 4294967294, %s1146_s12   ;;  %s1146_s12 = sphi %s1177_s12, %s1431_s12   ;;  %s1142_s11 = sphi %s1175_s11, %s1430_s11   ;;  %s1138_s10 = sphi %s1173_s10, %s1429_s10   ;;  %s1134_s9 = sphi %s1171_s9, %s1428_s9  }
   0x8   : > { %s1196_s15 = sadd.s32 1, %s1146_s12   ;;  %s28_s16 = sadd.s32 1, %s1142_s11 }
   0x9   : > { %s25_s17 = ssub.s32 %s1146_s12, %s1196_s15  ;;  %p35_p0 = scmp.ne.s32.totalorder %s1142_s11, %s1138_s10 }
   0xa   : > { %p26_p1 = scmp.eq.s32.totalorder %s25_s17, 0  ;;  %p36_p2 = scmp.eq.s32.totalorder %s1146_s12, 0 }
   0xb   : > { %p41_p3 = scmp.ne.s32.totalorder %s1138_s10, %s1134_s9  ;;  %p42_p4 = scmp.eq.s32.totalorder %s1192_s13, 0 }
   0xc   : > { %s1208_s18 = scalar_select %p26_p1, %s1142_s11, %s28_s16  }
   0xd   : > { %p1210_p5 = por %p36_p2, %p35_p0  ;;  %p1214_p6 = por %p42_p4, %p41_p3 }
   0xe   : > { %p91_p7 = scmp.eq.s32.totalorder %s1192_s13, 1  ;;  %p97_p8 = scmp.eq.s32.totalorder %s802_s14, 1 }
   0xf   : > { %s1417_s20 = scalar_select %p1214_p6, 1, 0 }
  0x10   : > { %p977_p10 = scmp.lt.s32.totalorder %s1146_s12, 2  ;;  %p1221_p11 = por %p91_p7, %p35_p0 }
  0x11   : > { %p1225_p12 = por %p97_p8, %p41_p3  ;;  %s1230_s23 = sand.u32 1, %s1142_s11  }
  0x12   : > { %s1418_s21 = scalar_select %p1221_p11, 1, 0 }
  0x13   : > { %s1419_s22 = scalar_select %p1225_p12, 1, 0 }
  0x14   : > { %s806_s24 = sshll.u32 %s1146_s12, 7  ;;  %s805_s25 = sshll.u32 %s1230_s23, 3 }
  0x15   : > { %s1237_s28 = scalar_lea.hbm %s1411_s0, %s806_s24  ;;  %s121_s29 = scalar_lea.vmem [#allocation2], %s805_s25 }
  0x16   : > { %s128_s30 = sshll.u32 %s121_s29, 4  ;;  %p1241_p13 = pnand %p977_p10, %p1210_p5  ;;  %s1245_s30 = int_to_ptr.vmem [resolvable:$true] %s128_s30 }
  0x17   : > { %s118_s4 = scalar_lea.sflag [#allocation3], %s1230_s23  ;;  %s1016_s5 = scalar_lea.hbm %s1237_s28, 128 }
  0x18   : > { %p1017_p2 = scmp.ne.s32.totalorder %s1237_s28, %s1016_s5  ;;  %p1018_p3 = pneg %p1241_p13 }
  0x19   : > { %s1021_s8 = scalar_lea.hbm %s1411_s0, 256  ;;  %p1022_p5 = scmp.lt.u32.totalorder %s1237_s28, %s1411_s0 }
  0x1a   : > { %p1019_p4 = pnand %p1018_p3, %p1017_p2  ;;  %p1023_p8 = scmp.lt.u32.totalorder %s1021_s8, %s1016_s5 }
  0x1b   : > { %p1025_p9 = scmp.lt.u32.totalorder %s1016_s5, %s1237_s28 }
  0x1c   : > { %p1020_p7 = pneg %p1019_p4  ;;  %p1024_p10 = por %p1023_p8, %p1022_p5 }
  0x1e   : > { %p1026_p0 = por %p1025_p9, %p1024_p10 }
  0x20   : > { %p1027_p1 = pnand %p1026_p0, %p1020_p7 }
  0x22   : > { %1030 = shalt.err (!%p1027_p1)
}
  0x23   : > { %s1031_s17 = scalar_lea.vmem %s1245_s30, 128  ;;  %s1148_s19 = smov [#allocation2]  }
  0x24   : > { %p1032_p2 = scmp.ne.s32.totalorder %s1245_s30, %s1031_s17  ;;  %s1036_s24 = sshll.u32 %s1148_s19, 4  ;;  %s1037_s24 = int_to_ptr.vmem [resolvable:$false] %s1036_s24 }
  0x25   : > { %s1038_s25 = scalar_lea.vmem %s1037_s24, 256  ;;  %p1039_p11 = scmp.lt.s32.totalorder %s1245_s30, %s1037_s24 }
  0x26   : > { %p1034_p4 = pnand %p1032_p2, %p1018_p3  ;;  %p1040_p5 = scmp.lt.s32.totalorder %s1038_s25, %s1031_s17 }
  0x28   : > { %p1035_p12 = pneg %p1034_p4  ;;  %p1041_p8 = por %p1040_p5, %p1039_p11 }
  0x2a   : > { %p1042_p9 = pnand %p1041_p8, %p1035_p12 }
  0x2c   : > { %1045 = shalt.err (!%p1042_p9)
}
  0x2d   : > { %969 = dma.hbm_to_vmem [thread:$0]  (!%p1241_p13), %s1237_s28, 128, %s1245_s30, %s118_s4  }
  0x2e   : > { %p1421_p0 = scmp.lt.s32.totalorder %s1146_s12, 3  ;;  %p1422_p1 = scmp.ge.s32.totalorder %s1146_s12, 1 }
  0x2f   : > { %s807_s27 = sshll.u32 %s1230_s23, 5  ;;  %s818_s29 = sshll.u32 %s1146_s12, 9 }
  0x30   : > { %p1279_p7 = pnand %p1422_p1, %p1421_p0  ;;  %s1288_s7 = scalar_lea.hbm %s1412_s1, %s818_s29 }
  0x31   : > { %s139_s8 = scalar_lea.vmem [#allocation5], %s807_s27  ;;  %s136_s28 = scalar_lea.sflag [#allocation6], %s1230_s23 }
  0x32   : > { %s146_s14 = sshll.u32 %s139_s8, 4  ;;  %s1046_s30 = scalar_lea.hbm %s1288_s7, 512  ;;  %s1290_s14 = int_to_ptr.vmem [resolvable:$true] %s146_s14 }
  0x33   : > { %p1047_p11 = scmp.ne.s32.totalorder %s1288_s7, %s1046_s30  ;;  %s1051_s17 = scalar_lea.hbm %s1412_s1, 1024 }
  0x34   : > { %p1052_p2 = scmp.lt.u32.totalorder %s1288_s7, %s1412_s1  ;;  %p1053_p4 = scmp.lt.u32.totalorder %s1051_s17, %s1046_s30 }
  0x35   : > { %p1049_p12 = pnand %p1047_p11, %p1018_p3  ;;  %p1055_p8 = scmp.lt.u32.totalorder %s1046_s30, %s1288_s7 }
  0x36   : > { %p1054_p5 = por %p1053_p4, %p1052_p2 }
  0x37   : > { %p1050_p10 = pneg %p1049_p12 }
  0x38   : > { %p1056_p9 = por %p1055_p8, %p1054_p5 }
  0x3a   : > { %p1057_p0 = pnand %p1056_p9, %p1050_p10 }
  0x3c   : > { %1060 = shalt.err (!%p1057_p0)
}
  0x3d   : > { %s1061_s25 = scalar_lea.vmem %s1290_s14, 512  ;;  %s1149_s27 = smov [#allocation5]  }
  0x3e   : > { %p1062_p1 = scmp.ne.s32.totalorder %s1290_s14, %s1061_s25  ;;  %s1066_s29 = sshll.u32 %s1149_s27, 4  ;;  %s1067_s29 = int_to_ptr.vmem [resolvable:$false] %s1066_s29 }
  0x3f   : > { %s1068_s5 = scalar_lea.vmem %s1067_s29, 1024  ;;  %p1069_p6 = scmp.lt.s32.totalorder %s1290_s14, %s1067_s29 }
  0x40   : > { %p1064_p11 = pnand %p1062_p1, %p1018_p3  ;;  %p1070_p2 = scmp.lt.s32.totalorder %s1068_s5, %s1061_s25 }
  0x42   : > { %p1065_p12 = pneg %p1064_p11  ;;  %p1071_p4 = por %p1070_p2, %p1069_p6 }
  0x44   : > { %p1072_p5 = pnand %p1071_p4, %p1065_p12 }
  0x46   : > { %1075 = shalt.err (!%p1072_p5)
}
  0x47   : > { %s1150_s6 = smov 128   ;;  %s1151_s8 = smov 8  }
  0x48   : > { %972 = dma.hbm_to_vmem [thread:$0]  (!%p1241_p13), %s1288_s7, 512, %s1290_s14, %s136_s28, %s1150_s6, %s1150_s6, %s1151_s8  }
  0x49   : > { %158 = sbr.rel (%p1279_p7) target bundleno = 343 (0x157), region = 28  ;;  %s1321_s30 = sand.u32 (!%p1279_p7), 1, %s1138_s10  }
  0x4a   : > { %s811_s4 = sshll.u32 (!%p1279_p7), %s1321_s30, 3  ;;  %s161_s16 = scalar_lea.sflag (!%p1279_p7), [#allocation3], %s1321_s30 }
  0x4b   : > { %s164_s17 = scalar_lea.vmem (!%p1279_p7), [#allocation2], %s811_s4  ;;  %p1424_p6 = scmp.ne.s32.totalorder (!%p1279_p7), %s1417_s20, 0 }
  0x50   : > { %1121 = dma.done.wait (%p1424_p6), %s161_s16, 128  }
  0x51   : > { %1123 = vsyncadd (%p1424_p6), %s161_s16, 4294967168  ;;  %s812_s23 = sshll.u32 %s1321_s30, 5  ;;  %s170_s3 = scalar_lea.sflag [#allocation6], %s1321_s30 }
  0x52   : > { %s173_s26 = scalar_lea.vmem [#allocation5], %s812_s23 }
  0x53   : > { %1125 = dma.done.wait (%p1424_p6), %s170_s3, 512  }
  0x54   : > { %1127 = vsyncadd (%p1424_p6), %s170_s3, 4294966784  ;;  %v1152_v0 = vmov 0.0|0.0   ;;  %vm1153_vm0 = vmmov 0   ;;  %v1154_v1 = vmov 0.0   ;;  %vm204_vm1 = vcmask 261120   ;;  %v200_v2 = vld [vmem:[%s173_s26] sm:$0xff] }
  0x55   : > { %915 = vmatprep.subr.bf16.mxu1 %v1152_v0  ;;  %933 = vmatprep.subr.bf16.mxu0 %v1152_v0  ;;  %v201_v3 = vld [vmem:[%s173_s26 + $0x8] sm:$0xff]  ;;  %v202_v4 = vld [vmem:[%s173_s26 + $0x10] sm:$0xff]  ;;  %v209_v5 = vand.u32 4294901760, %v200_v2  ;;  %v203_v7 = vld [vmem:[%s173_s26 + $0x18] sm:$0xff]  ;;  %s815_s20 = sshll.u32 %s1192_s13, 7  ;;  %s198_s7 = scalar_lea.vmem [#allocation7], %s811_s4 }
  0x56   : > { %857 = vmatprep.mubr.msk.f32.mxu1 %vm1153_vm0, %v1154_v1  ;;  %890 = vmatprep.mubr.msk.f32.mxu0 %vm1153_vm0, %v1154_v1  ;;  %v212_v6 = vand.u32 4294901760, %v201_v3  ;;  %v215_v8 = vand.u32 4294901760, %v202_v4  ;;  %v199_v9 = vld [vmem:[%s164_s17] sm:$0xff]  ;;  %v218_v10 = vand.u32 4294901760, %v203_v7  ;;  %s709_s14 = sshll.u32 %s198_s7, 4  ;;  %vm693_vm2 = vcmask 785408   ;;  %s1367_s24 = scalar_lea.hbm %s1413_s2, %s815_s20  ;;  %s1369_s14 = int_to_ptr.vmem [resolvable:$true] %s709_s14 }
  0x57   : > { %v206_v11 = vsel %vm204_vm1, %v199_v9, 0  ;;  %v289_v13 = vsub.f32 %v200_v2, %v209_v5  ;;  %s696_s13 = scalar_lea.sflag [#allocation4], %s1321_s30  ;;  %s1076_s25 = scalar_lea.vmem %s1369_s14, 128 }
  0x58   : > { %v916_v12 = vpack.c.bf16 %v212_v6, %v209_v5  ;;  %v296_v14 = vsub.f32 %v201_v3, %v212_v6  ;;  %v303_v15 = vsub.f32 %v202_v4, %v215_v8  ;;  %v310_v16 = vsub.f32 %v203_v7, %v218_v10  ;;  %p1077_p13 = scmp.ne.s32.totalorder %s1369_s14, %s1076_s25  ;;  %p1425_p3 = scmp.ne.s32.totalorder %s1418_s21, 0 }
  0x59   : > { %v277_v17 = vand.u32 4294901760, %v206_v11  ;;  %v919_v18 = vpack.c.bf16 %v218_v10, %v215_v8  ;;  %v290_v19 = vand.u32 4294901760, %v289_v13  ;;  %s1155_s27 = smov [#allocation7]  }
  0x5a   : > { %917 = vmatpush3.bf16.msra.mxu1 %v916_v12  ;;  %935 = vmatpush3.bf16.msra.mxu0 %v916_v12  ;;  %v297_v20 = vand.u32 4294901760, %v296_v14  ;;  %v304_v21 = vand.u32 4294901760, %v303_v15  ;;  %v311_v23 = vand.u32 4294901760, %v310_v16  ;;  %v928_v39 = vpack.c.bf16 %v296_v14, %v289_v13  ;;  %p1078_p7 = pnand %p1077_p13, %p1425_p3  ;;  %s1080_s29 = sshll.u32 %s1155_s27, 4  ;;  %s1081_s29 = int_to_ptr.vmem [resolvable:$false] %s1080_s29 }
  0x5b   : > { %918 = vmatprep.subr.bf16.mxu1 %v1152_v0  ;;  %936 = vmatprep.subr.bf16.mxu0 %v1152_v0  ;;  %v278_v22 = vsub.f32 %v206_v11, %v277_v17  ;;  %v291_v24 = vsub.f32 %v289_v13, %v290_v19  ;;  %v931_v40 = vpack.c.bf16 %v310_v16, %v303_v15  ;;  %s1082_s5 = scalar_lea.vmem %s1081_s29, 256  ;;  %p1083_p8 = scmp.lt.s32.totalorder %s1369_s14, %s1081_s29 }
  0x5c   : > { %v298_v25 = vsub.f32 %v296_v14, %v297_v20  ;;  %v305_v26 = vsub.f32 %v303_v15, %v304_v21  ;;  %v312_v28 = vsub.f32 %v310_v16, %v311_v23  ;;  %v940_v31 = vpack.c.bf16 %v297_v20, %v290_v19  ;;  %p1079_p10 = pneg %p1078_p7  ;;  %p1084_p9 = scmp.lt.s32.totalorder %s1082_s5, %s1076_s25 }
  0x5d   : > { %v279_v27 = vand.u32 4294901760, %v278_v22  ;;  %v292_v29 = vand.u32 4294901760, %v291_v24  ;;  %v943_v37 = vpack.c.bf16 %v311_v23, %v304_v21 }
  0x5e   : > { %920 = vmatpush3.bf16.msra.mxu1 %v919_v18  ;;  %938 = vmatpush3.bf16.msra.mxu0 %v919_v18  ;;  %v299_v30 = vand.u32 4294901760, %v298_v25  ;;  %v306_v34 = vand.u32 4294901760, %v305_v26  ;;  %v313_v35 = vand.u32 4294901760, %v312_v28  ;;  %p1085_p0 = por %p1084_p9, %p1083_p8 }
  0x5f   : > { %v280_v32 = vsub.f32 %v278_v22, %v279_v27  ;;  %921 = vmatprep.subr.bf16.mxu1 %v1152_v0  ;;  %939 = vmatprep.subr.bf16.mxu0 %v1152_v0 }
  0x60   : > { %v922_v33 = vpack.c.bf16 %v299_v30, %v292_v29  ;;  %v925_v38 = vpack.c.bf16 %v313_v35, %v306_v34  ;;  %p1086_p1 = pnand %p1085_p0, %p1079_p10 }
  0x61   : > { %v281_v36 = vand.u32 4294901760, %v280_v32  ;;  %891 = vmatmul.mubr.f32.vlgmr.msra.gmra.mrb[0].mxu0 %v279_v27 }
  0x62   : > { %941 = vmatpush3.bf16.msra.mxu0 %v940_v31  ;;  %901 = vmatprep.mubr.msk.f32.mxu0 %vm1153_vm0, %v1154_v1 }
  0x63   : > { %858 = vmatmul.mubr.f32.vlgmr.msra.gmra.mrb[0].mxu1 %v281_v36  ;;  %942 = vmatprep.subr.bf16.mxu0 %v1152_v0 }
  0x64   : > { %923 = vmatpush3.bf16.msra.mxu1 %v922_v33  ;;  %868 = vmatprep.mubr.msk.f32.mxu1 %vm1153_vm0, %v1154_v1 }
  0x65   : > { %924 = vmatprep.subr.bf16.mxu1 %v1152_v0 }
  0x66   : > { %944 = vmatpush3.bf16.msra.mxu0 %v943_v37 }
  0x67   : > { %945 = vmatprep.subr.bf16.mxu0 %v1152_v0 }
  0x68   : > { %926 = vmatpush3.bf16.msra.mxu1 %v925_v38 }
  0x69   : > { %927 = vmatprep.subr.bf16.mxu1 %v1152_v0  ;;  %902 = vmatmul.mubr.f32.vlgmr.msra.gmra.mrb[0].mxu0 %v277_v17 }
  0x6a   : > { %947 = vmatpush3.bf16.msra.mxu0 %v916_v12  ;;  %912 = vmatprep.mubr.msk.f32.mxu0 %vm1153_vm0, %v1154_v1 }
  0x6b   : > { %869 = vmatmul.mubr.f32.vlgmr.msra.gmra.mrb[0].mxu1 %v277_v17  ;;  %948 = vmatprep.subr.bf16.mxu0 %v1152_v0 }
  0x6c   : > { %929 = vmatpush3.bf16.msra.mxu1 %v928_v39  ;;  %879 = vmatprep.mubr.msk.f32.mxu1 %vm1153_vm0, %v1154_v1 }
  0x6d   : > { %930 = vmatprep.subr.bf16.mxu1 %v1152_v0 }
  0x6e   : > { %950 = vmatpush3.bf16.msra.mxu0 %v919_v18 }
  0x70   : > { %932 = vmatpush3.bf16.msra.mxu1 %v931_v40 }
  0x71   : > { %913 = vmatmul.mubr.f32.vlgmr.msra.gmra.mrb[0].mxu0 %v277_v17 }
  0x73   : > { %880 = vmatmul.mubr.f32.vlgmr.msra.gmra.mrb[0].mxu1 %v278_v22 }
 0x144   : > { %v689_v41 = vpop.f32.mrb[0].mxu0 }
 0x145   : > { %v914_v42 = vpop.f32.mrb[1].mxu0 }
 0x146   : > { %v454_v43 = vpop.f32.mrb[0].mxu1 }
 0x147   : > { %v951_v44 = vadd.f32 %v689_v41, %v454_v43  ;;  %v881_v45 = vpop.f32.mrb[1].mxu1 }
 0x149   : > { %694 = vst.msk [vmem:[%s198_s7] sm:$0xff] %vm693_vm2, %v951_v44 }
 0x14a   : > { %1089 = shalt.err (!%p1086_p1)
}
 0x14b   : > { %s1090_s6 = scalar_lea.hbm %s1367_s24, 128  ;;  %s1094_s4 = scalar_lea.hbm %s1413_s2, 256 }
 0x14c   : > { %p1091_p11 = scmp.ne.s32.totalorder %s1367_s24, %s1090_s6  ;;  %p1095_p4 = scmp.lt.u32.totalorder %s1367_s24, %s1413_s2 }
 0x14d   : > { %p1096_p5 = scmp.lt.u32.totalorder %s1094_s4, %s1090_s6  ;;  %p1098_p13 = scmp.lt.u32.totalorder %s1090_s6, %s1367_s24 }
 0x14e   : > { %p1092_p12 = pnand %p1091_p11, %p1425_p3 }
 0x14f   : > { %p1097_p6 = por %p1096_p5, %p1095_p4 }
 0x150   : > { %p1093_p2 = pneg %p1092_p12 }
 0x151   : > { %p1099_p7 = por %p1098_p13, %p1097_p6 }
 0x153   : > { %p1100_p10 = pnand %p1099_p7, %p1093_p2 }
 0x155   : > { %1103 = shalt.err (!%p1100_p10)
}
 0x156   : > { %964 = dma.vmem_to_hbm [thread:$0]  (%p1425_p3), %s1369_s14, 128, %s1367_s24, %s696_s13  }
 0x157 PF: > { %s721_s23 = sand.u32 1, %s1134_s9   ;;  %p1426_p8 = scmp.ne.s32.totalorder %s1419_s22, 0 }
 0x158   : > { %p1427_p9 = scmp.ge.s32.totalorder %s1146_s12, 2  ;;  %s722_s3 = scalar_lea.sflag [#allocation4], %s721_s23 }
 0x15a   : > { %p974_p0 = pnand %p1427_p9, %p1426_p8 }
 0x15c   : > { %1129 = dma.done.wait (!%p974_p0), %s722_s3, 128  }
 0x15d   : > { %1131 = vsyncadd (!%p974_p0), %s722_s3, 4294967168  ;;  %p18_p1 = scmp.ge.s32.totalorder %s1196_s15, 4   ;;  %s1428_s9 = smov %s1138_s10 }
 0x15e   : > { %s1429_s10 = smov %s1142_s11  ;;  %s1430_s11 = smov %s1208_s18 }
 0x15f   : > { %s1431_s12 = smov %s1196_s15  ;;  %20 = sbr.rel (!%p18_p1) target bundleno = 7 (0x7), region = 86 }
 0x166   :  { %727 = vsyncpa [#allocation3], 1 }
 0x167   :  { %729 = vsyncpa [#allocation3 + $0x1], 1 }
 0x168   :  { %730 = vsyncpa [#allocation6], 1 }
 0x169   :  { %732 = vsyncpa [#allocation6 + $0x1], 1 }
 0x16a   :  { %733 = vsyncpa [#allocation4], 1 }
 0x16b   :  { %735 = vsyncpa [#allocation4 + $0x1], 1 }

</bundles_post_ra>
